<compile_context>
chip_gen: v7x
topology: tpu7x:2x2x1
jax: 0.10.0
libtpu: 0.0.40
codegen_flags: <defaults>
</compile_context>

<pallas_src>
import jax
import jax.numpy as jnp
from jax.experimental import pallas as pl
from jax.experimental.pallas import tpu as pltpu

IN_DIM = 512
HID_DIM = 256
OUT_DIM = 1


def _round_up(a: int, m: int) -> int:
    return (a + m - 1) // m * m


def _mlp_kernel(x_ref, w1_ref, b1_ref, w2_ref, b2_ref, o_ref):
    # In-kernel cast to bf16 (no-op if x already streamed as bf16).  The VPU
    # convert is fully hidden under the x DMA of the next tile.
    x = x_ref[...].astype(jnp.bfloat16)

    # Layer 1: (TB, 512) bf16 @ (512, 256) bf16 -> f32 accumulate on the MXU.
    h = jnp.dot(x, w1_ref[...], preferred_element_type=jnp.float32)
    h = jnp.maximum(h + b1_ref[...], 0.0)          # bias + ReLU in f32 (VPU)

    # Layer 2 (256 -> 1): VPU multiply + XLU lane reduction; avoids an N=1
    # MXU matmul that would waste >99% of the result path.  b2 is a scalar
    # read from SMEM.
    z = jnp.sum(h * w2_ref[...], axis=-1, keepdims=True) + b2_ref[0, 0]

    # Sigmoid: EUP exp + exact reciprocal (kernel is DMA-bound -> exactness is
    # free and removes the approx-reciprocal error).
    o_ref[...] = pl.reciprocal(1.0 + jnp.exp(-z), approx=False).astype(o_ref.dtype)


def attack_model_forward(x, w1, b1, w2, b2, *, block_b: int = 2048):
    """x: (B, 512) f32 or bf16 -> (B, 1) f32, matching AttackModel.forward.

    Weights stored pre-transposed as (in, out): y = sigmoid(relu(x@W1+b1)@W2+b2).
    x is streamed in its native dtype and cast to bf16 inside the kernel; for
    peak v5e throughput deliver x as bf16 from the producer.
    """
    B = x.shape[0]

    # Sublane granularity: bf16 rows pack 2-per-sublane -> 16, f32 -> 8.
    sub = 16 if x.dtype == jnp.bfloat16 else 8

    # Tile size: cap at block_b, but also cap near B/4 so the grid has >= ~4
    # steps for large-enough B (lets v7x shard tiles over both TensorCores).
    tb = min(_round_up(block_b, sub),
             _round_up(max(pl.cdiv(B, 4), 1), sub))
    tb = max(tb, sub)
    grid_b = pl.cdiv(B, tb)   # ragged last tile allowed; OOB rows discarded.

    x_bytes = jnp.dtype(x.dtype).itemsize

    # Small resident tensors: W1 as bf16 (one-time tiny convert), rest f32.
    w1_bf16 = w1.astype(jnp.bfloat16)
    b1_2d = b1.reshape(1, HID_DIM).astype(jnp.float32)
    w2_row = w2.reshape(OUT_DIM, HID_DIM).astype(jnp.float32)   # (1, 256)
    b2_2d = b2.reshape(1, OUT_DIM).astype(jnp.float32)          # scalar -> SMEM

    cost = pl.CostEstimate(
        flops=2 * B * IN_DIM * HID_DIM + 2 * B * HID_DIM,
        transcendentals=B,
        bytes_accessed=(B * IN_DIM * x_bytes           # x (native dtype)
                        + IN_DIM * HID_DIM * 2         # W1 (bf16)
                        + (2 * HID_DIM + OUT_DIM) * 4  # b1, W2, b2 (f32)
                        + B * OUT_DIM * 4),            # output (f32)
    )

    out = pl.pallas_call(
        _mlp_kernel,
        out_shape=jax.ShapeDtypeStruct((B, OUT_DIM), jnp.float32),
        grid=(grid_b,),
        in_specs=[
            pl.BlockSpec((tb, IN_DIM), lambda i: (i, 0)),        # streamed x
            pl.BlockSpec((IN_DIM, HID_DIM), lambda i: (0, 0)),   # resident W1
            pl.BlockSpec((1, HID_DIM), lambda i: (0, 0)),        # resident b1
            pl.BlockSpec((OUT_DIM, HID_DIM), lambda i: (0, 0)),  # resident W2
            pl.BlockSpec(memory_space=pltpu.MemorySpace.SMEM),   # b2 scalar
        ],
        out_specs=pl.BlockSpec((tb, OUT_DIM), lambda i: (i, 0)),
        compiler_params=pltpu.CompilerParams(
            dimension_semantics=("parallel",),   # v7x: shard tiles over 2 TCs
            vmem_limit_bytes=32 * 1024 * 1024,   # x dbl-buf + f32 h + weights
        ),
        cost_estimate=cost,
    )(x, w1_bf16, b1_2d, w2_row, b2_2d)

    return out


def init_params(key):
    """Deterministic init mimicking PyTorch nn.Linear default
    (uniform(-1/sqrt(fan_in), 1/sqrt(fan_in))). Weights stored as (in, out)."""
    k1, k2, k3, k4 = jax.random.split(key, 4)
    bound1 = 1.0 / jnp.sqrt(jnp.float32(IN_DIM))
    bound2 = 1.0 / jnp.sqrt(jnp.float32(HID_DIM))
    w1 = jax.random.uniform(k1, (IN_DIM, HID_DIM), jnp.float32, -bound1, bound1)
    b1 = jax.random.uniform(k2, (HID_DIM,), jnp.float32, -bound1, bound1)
    w2 = jax.random.uniform(k3, (HID_DIM, OUT_DIM), jnp.float32, -bound2, bound2)
    b2 = jax.random.uniform(k4, (OUT_DIM,), jnp.float32, -bound2, bound2)
    return w1, b1, w2, b2


def _reference(x, w1, b1, w2, b2):
    h = jnp.maximum(x @ w1 + b1, 0.0)
    return jax.nn.sigmoid(h @ w2 + b2)


if __name__ == "__main__":
    key = jax.random.PRNGKey(0)
    kx, kp = jax.random.split(key)

    # B=21 with block_b=16 exercises the real code paths at small scale:
    # tb=8, 3 grid steps (pipelined, resident weights) + a ragged last tile
    # (5 valid rows) whose out-of-bounds rows are discarded, not padded.
    B = 21
    x = jax.random.normal(kx, (B, IN_DIM), jnp.float32)
    w1, b1, w2, b2 = init_params(kp)

    out = attack_model_forward(x, w1, b1, w2, b2, block_b=16)
    out = jax.block_until_ready(out)

    ref = _reference(x, w1, b1, w2, b2)
    assert out.shape == (B, OUT_DIM)
    # Remaining error is only the in-kernel bf16 quantization of x/W1
    # (exact reciprocal now) -> tightened tolerance vs the f32 reference.
    max_err = float(jnp.max(jnp.abs(out - ref)))
    assert jnp.allclose(out, ref, atol=1e-2, rtol=1e-2), max_err

    print("KERNEL_OK")
</pallas_src>

<mosaic_0001>
module attributes {stable_mosaic.version = 11 : i64} {
  func.func @_mlp_kernel(%arg0: i32, %arg1: memref<8x512xf32, #tpu.memory_space<vmem>>, %arg2: memref<512x256xbf16, #tpu.memory_space<vmem>>, %arg3: memref<1x256xf32, #tpu.memory_space<vmem>>, %arg4: memref<1x256xf32, #tpu.memory_space<vmem>>, %arg5: memref<1x1xf32, #tpu.memory_space<smem>>, %arg6: memref<8x1xf32, #tpu.memory_space<vmem>>) attributes {dimension_semantics = [#tpu.dimension_semantics<parallel>], iteration_bounds = array<i64: 3>, scalar_prefetch = 0 : i64, scratch_operands = 0 : i64, tpu.core_type = #tpu.core_type<tc>, window_params = [{transform_indices = @transform_0, window_bounds = array<i64: 8, 512>}, {pipeline_mode = #tpu.pipeline_mode<synchronous>, transform_indices = @transform_1, window_bounds = array<i64: 512, 256>}, {pipeline_mode = #tpu.pipeline_mode<synchronous>, transform_indices = @transform_2, window_bounds = array<i64: 1, 256>}, {pipeline_mode = #tpu.pipeline_mode<synchronous>, transform_indices = @transform_3, window_bounds = array<i64: 1, 256>}, {transform_indices = @transform_4, window_bounds = array<i64: 1, 1>}, {transform_indices = @transform_5, window_bounds = array<i64: 8, 1>}]} {
    %c0 = arith.constant 0 : index
    %c0_0 = arith.constant 0 : index
    %0 = vector.load %arg1[%c0, %c0_0] : memref<8x512xf32, #tpu.memory_space<vmem>>, vector<8x512xf32>
    %1 = arith.truncf %0 : vector<8x512xf32> to vector<8x512xbf16>
    %c0_1 = arith.constant 0 : index
    %c0_2 = arith.constant 0 : index
    %2 = vector.load %arg2[%c0_1, %c0_2] : memref<512x256xbf16, #tpu.memory_space<vmem>>, vector<512x256xbf16>
    %cst = arith.constant dense<0.000000e+00> : vector<8x256xf32>
    %3 = tpu.matmul %1, %2, %cst {dimension_numbers = #tpu.dot_dimension_numbers<[1], [0], [0], [1], [0, 0, 1, 1], [], []>} : vector<8x512xbf16>, vector<512x256xbf16>, vector<8x256xf32> -> vector<8x256xf32>
    %c0_3 = arith.constant 0 : index
    %c0_4 = arith.constant 0 : index
    %4 = vector.load %arg3[%c0_3, %c0_4] : memref<1x256xf32, #tpu.memory_space<vmem>>, vector<1x256xf32>
    %5 = vector.broadcast %4 : vector<1x256xf32> to vector<8x256xf32>
    %6 = arith.addf %3, %5 : vector<8x256xf32>
    %cst_5 = arith.constant 0.000000e+00 : f32
    %7 = vector.broadcast %cst_5 : f32 to vector<8x256xf32>
    %8 = arith.maximumf %6, %7 : vector<8x256xf32>
    %c0_6 = arith.constant 0 : index
    %c0_7 = arith.constant 0 : index
    %9 = vector.load %arg4[%c0_6, %c0_7] : memref<1x256xf32, #tpu.memory_space<vmem>>, vector<1x256xf32>
    %10 = vector.broadcast %9 : vector<1x256xf32> to vector<8x256xf32>
    %11 = arith.mulf %8, %10 : vector<8x256xf32>
    %cst_8 = arith.constant dense<0.000000e+00> : vector<8xf32>
    %12 = vector.multi_reduction <add>, %11, %cst_8 [1] : vector<8x256xf32> to vector<8xf32>
    %13 = vector.shape_cast %12 : vector<8xf32> to vector<8x1xf32>
    %c0_9 = arith.constant 0 : index
    %c0_10 = arith.constant 0 : index
    %14 = memref.load %arg5[%c0_9, %c0_10] : memref<1x1xf32, #tpu.memory_space<smem>>
    %15 = vector.broadcast %14 : f32 to vector<8x1xf32>
    %16 = arith.addf %13, %15 : vector<8x1xf32>
    %cst_11 = arith.constant 0.000000e+00 : f32
    %17 = vector.broadcast %cst_11 : f32 to vector<8x1xf32>
    %18 = arith.subf %17, %16 : vector<8x1xf32>
    %19 = math.exp %18 : vector<8x1xf32>
    %cst_12 = arith.constant 1.000000e+00 : f32
    %20 = vector.broadcast %cst_12 : f32 to vector<8x1xf32>
    %21 = arith.addf %20, %19 : vector<8x1xf32>
    %22 = tpu.reciprocal %21 : vector<8x1xf32> -> vector<8x1xf32>
    %c0_13 = arith.constant 0 : index
    %c0_14 = arith.constant 0 : index
    %23 = vector.load %arg6[%c0_13, %c0_14] : memref<8x1xf32, #tpu.memory_space<vmem>>, vector<8x1xf32>
    tpu.vector_store %arg6[%c0_13, %c0_14], %22 {strides = array<i32>} : memref<8x1xf32, #tpu.memory_space<vmem>>, vector<8x1xf32>,
    return
  }
  func.func @transform_0(%arg0: i32) -> (i32, i32) {
    %c0_i32 = arith.constant 0 : i32
    %c0_i32_0 = arith.constant 0 : i32
    return %arg0, %c0_i32 : i32, i32
  }
  func.func @transform_1(%arg0: i32) -> (i32, i32) {
    %c0_i32 = arith.constant 0 : i32
    %c0_i32_0 = arith.constant 0 : i32
    %c0_i32_1 = arith.constant 0 : i32
    return %c0_i32, %c0_i32_0 : i32, i32
  }
  func.func @transform_2(%arg0: i32) -> (i32, i32) {
    %c0_i32 = arith.constant 0 : i32
    %c0_i32_0 = arith.constant 0 : i32
    %c0_i32_1 = arith.constant 0 : i32
    return %c0_i32, %c0_i32_0 : i32, i32
  }
  func.func @transform_3(%arg0: i32) -> (i32, i32) {
    %c0_i32 = arith.constant 0 : i32
    %c0_i32_0 = arith.constant 0 : i32
    %c0_i32_1 = arith.constant 0 : i32
    return %c0_i32, %c0_i32_0 : i32, i32
  }
  func.func @transform_4(%arg0: i32) -> (i32, i32) {
    %c0_i32 = arith.constant 0 : i32
    %c0_i32_0 = arith.constant 0 : i32
    %c0_i32_1 = arith.constant 0 : i32
    return %c0_i32, %c0_i32_0 : i32, i32
  }
  func.func @transform_5(%arg0: i32) -> (i32, i32) {
    %c0_i32 = arith.constant 0 : i32
    %c0_i32_0 = arith.constant 0 : i32
    return %arg0, %c0_i32 : i32, i32
  }
}

</mosaic_0001>

<bundles_post_ra>
// kernel: tpu_custom_call.1
= control target key start
LH: loop header
LB: loop body
LE: loop exit
PB: predicated region body
PF: predicated region fallthrough
CT: control target
= control target key end

     0   :  { %s1367_s0 = inlined_call_operand.hbm [shape: f32[21,512], index: 0, kind: input, shape index: {}]   ;;  %s1368_s1 = inlined_call_operand.hbm [shape: bf16[512,256], index: 1, kind: input, shape index: {}]   ;;  %s1369_s2 = inlined_call_operand.vmem [shape: f32[1,256], index: 2, kind: input, shape index: {}]   ;;  %s1370_s3 = inlined_call_operand.vmem [shape: f32[1,256], index: 3, kind: input, shape index: {}]   ;;  %s1371_s4 = inlined_call_operand.<no memory space> [shape: f32[1,1], index: 4, kind: input, shape index: {}]   ;;  %s1372_s5 = inlined_call_operand.vmem [shape: f32[21,1], index: 5, kind: output, shape index: {}]  }
   0x1   :  { %10 = sst [smem:[#allocation2]] %s1371_s4 }
   0x2   :  { %11 = vsyncpa [#allocation4], 0 }
   0x3   :  { %13 = vsyncpa [#allocation4 + $0x1], 0 }
   0x4   :  { %14 = vsyncpa [#allocation6], 0  ;;  %s1216_s20 = smov 0   ;;  %s1218_s21 = smov 0  }
   0x5   :  { %s1220_s22 = smov 0   ;;  %s1222_s23 = smov 0  }
   0x6 LB: > { %s1235_s4 = sadd.s32 4294967295, %s1177_s23   ;;  %p40_p0 = scmp.ne.s32.totalorder %s1169_s21, %s1165_s20  ;;  %s1177_s23 = sphi %s1222_s23, %s1387_s23   ;;  %s1173_s22 = sphi %s1220_s22, %s1386_s22   ;;  %s1169_s21 = sphi %s1218_s21, %s1385_s21   ;;  %s1165_s20 = sphi %s1216_s20, %s1384_s20  }
   0x7   : > { %p1373_p1 = scmp.eq.s32.totalorder %s1235_s4, 0  ;;  %p848_p2 = scmp.ge.s32.totalorder %s1177_s23, 1 }
   0x8   : > { %p161_p3 = scmp.lt.s32.totalorder %s1177_s23, 4  ;;  %s1179_s26 = smov [#allocation5]  }
   0x9   : > { %p1243_p4 = por %p1373_p1, %p40_p0  ;;  %s173_s27 = sshll.u32 %s1179_s26, 4  ;;  %s174_s27 = int_to_ptr.vmem [resolvable:$true] %s173_s27 }
   0xa   : > { %p1247_p5 = pnand %p848_p2, %p161_p3  ;;  %s1260_s29 = sadd.s32 1, %s1177_s23  }
   0xb   : > { %s1376_s24 = scalar_select %p1243_p4, 1, 0 }
   0xc   : > { %s1377_s25 = scalar_select %p1247_p5, 1, 0 }
   0xd   : > { %p935_p6 = pneg %p1247_p5  ;;  %s27_s30 = sadd.s32 1, %s1173_s22 }
   0xe   : > { %s24_s6 = ssub.s32 %s1177_s23, %s1260_s29  ;;  %s1081_s9 = scalar_lea.hbm %s1368_s1, 8192 }
   0xf   : > { %p1255_p7 = pnand %p935_p6, %p1373_p1  ;;  %p1082_p8 = scmp.ne.s32.totalorder %s1368_s1, %s1081_s9 }
  0x10   : > { %p1088_p12 = scmp.lt.u32.totalorder %s1081_s9, %s1368_s1 }
  0x11   : > { %p1083_p9 = pneg %p1255_p7 }
  0x13   : > { %p1084_p10 = pnand %p1083_p9, %p1082_p8 }
  0x15   : > { %p1085_p11 = pneg %p1084_p10 }
  0x17   : > { %p1090_p13 = pnand %p1088_p12, %p1085_p11 }
  0x19   : > { %1093 = shalt.err (!%p1090_p13)
}
  0x1a   : > { %s1094_s14 = scalar_lea.vmem %s174_s27, 8192  ;;  %p1102_p6 = scmp.lt.s32.totalorder %s174_s27, %s174_s27 }
  0x1b   : > { %p1095_p0 = scmp.ne.s32.totalorder %s174_s27, %s1094_s14  ;;  %p1103_p1 = scmp.lt.s32.totalorder %s1094_s14, %s1094_s14 }
  0x1d   : > { %p1097_p2 = pnand %p1095_p0, %p1083_p9  ;;  %p1104_p4 = por %p1103_p1, %p1102_p6 }
  0x1f   : > { %p1098_p3 = pneg %p1097_p2 }
  0x21   : > { %p1105_p5 = pnand %p1104_p4, %p1098_p3 }
  0x23   : > { %1108 = shalt.err (!%p1105_p5)
}
  0x24   : > { %s1180_s15 = smov 128   ;;  %s1181_s16 = smov 8  }
  0x25   : > { %938 = dma.hbm_to_vmem [thread:$0]  (!%p1255_p7), %s1368_s1, 8192, %s174_s27, [#allocation6], %s1180_s15, %s1180_s15, %s1181_s16  }
  0x26   : > { %p25_p8 = scmp.eq.s32.totalorder %s24_s6, 0  ;;  %p34_p9 = scmp.ne.s32.totalorder %s1173_s22, %s1169_s21 }
  0x27   : > { %p35_p1 = scmp.eq.s32.totalorder %s1177_s23, 0  ;;  %p944_p4 = scmp.lt.s32.totalorder %s1177_s23, 3 }
  0x28   : > { %s1286_s19 = scalar_select %p25_p8, %s1173_s22, %s27_s30  }
  0x29   : > { %p36_p5 = por %p35_p1, %p34_p9  ;;  %s196_s20 = sand.u32 1, %s1173_s22  }
  0x2a   : > { %s851_s26 = sshll.u32 %s196_s20, 5  ;;  %s924_s7 = sshll.u32 %s1177_s23, 9 }
  0x2b   : > { %s1293_s10 = scalar_lea.hbm %s1367_s0, %s924_s7  ;;  %s200_s27 = scalar_lea.vmem [#allocation3], %s851_s26 }
  0x2c   : > { %s208_s28 = sshll.u32 %s200_s27, 4  ;;  %p1297_p7 = pnand %p944_p4, %p36_p5  ;;  %s1295_s28 = int_to_ptr.vmem [resolvable:$true] %s208_s28 }
  0x2d   : > { %s197_s23 = scalar_lea.sflag [#allocation4], %s196_s20  ;;  %s1109_s6 = scalar_lea.hbm %s1293_s10, 512 }
  0x2e   : > { %p1110_p10 = scmp.ne.s32.totalorder %s1293_s10, %s1109_s6  ;;  %p1111_p11 = pneg %p1297_p7 }
  0x2f   : > { %s1114_s13 = scalar_lea.hbm %s1367_s0, 1536  ;;  %p1115_p0 = scmp.lt.u32.totalorder %s1293_s10, %s1367_s0 }
  0x30   : > { %p1112_p12 = pnand %p1111_p11, %p1110_p10  ;;  %p1116_p2 = scmp.lt.u32.totalorder %s1114_s13, %s1109_s6 }
  0x31   : > { %p1118_p6 = scmp.lt.u32.totalorder %s1109_s6, %s1293_s10 }
  0x32   : > { %p1113_p13 = pneg %p1112_p12  ;;  %p1117_p3 = por %p1116_p2, %p1115_p0 }
  0x34   : > { %p1119_p8 = por %p1118_p6, %p1117_p3 }
  0x36   : > { %p1120_p9 = pnand %p1119_p8, %p1113_p13 }
  0x38   : > { %1123 = shalt.err (!%p1120_p9)
}
  0x39   : > { %s1124_s16 = scalar_lea.vmem %s1295_s28, 512  ;;  %s1182_s17 = smov [#allocation3]  }
  0x3a   : > { %p1125_p1 = scmp.ne.s32.totalorder %s1295_s28, %s1124_s16  ;;  %s1129_s18 = sshll.u32 %s1182_s17, 4  ;;  %s1130_s18 = int_to_ptr.vmem [resolvable:$false] %s1129_s18 }
  0x3b   : > { %s1131_s20 = scalar_lea.vmem %s1130_s18, 1024  ;;  %p1132_p10 = scmp.lt.s32.totalorder %s1295_s28, %s1130_s18 }
  0x3c   : > { %p1127_p4 = pnand %p1125_p1, %p1111_p11  ;;  %p1133_p12 = scmp.lt.s32.totalorder %s1131_s20, %s1124_s16 }
  0x3e   : > { %p1128_p5 = pneg %p1127_p4  ;;  %p1134_p0 = por %p1133_p12, %p1132_p10 }
  0x40   : > { %p1135_p2 = pnand %p1134_p0, %p1128_p5 }
  0x42   : > { %1138 = shalt.err (!%p1135_p2)
}
  0x43   : > { %942 = dma.hbm_to_vmem [thread:$0]  (!%p1297_p7), %s1293_s10, 512, %s1295_s28, %s197_s23  }
  0x44   : > { %p1380_p13 = scmp.ne.s32.totalorder %s1377_s25, 0 }
  0x45   : > { %s219_s26 = sand.u32 (!%p1380_p13), 1, %s1169_s21   ;;  %p1381_p11 = scmp.ne.s32.totalorder (!%p1380_p13), %s1376_s24, 0 }
  0x46   : > { %217 = sbr.rel (%p1380_p13) target bundleno = 542 (0x21e), region = 40  ;;  %s855_s7 = sshll.u32 (!%p1380_p13), %s219_s26, 5 }
  0x47   : > { %s220_s8 = scalar_lea.sflag (!%p1380_p13), [#allocation4], %s219_s26  ;;  %s1329_s9 = scalar_lea.vmem (!%p1380_p13), [#allocation3], %s855_s7 }
  0x4d   : > { %1156 = dma.done.wait (%p1381_p11), %s220_s8, 512  }
  0x4e   : > { %1158 = vsyncadd (%p1381_p11), %s220_s8, 4294966784  ;;  %p1382_p3 = scmp.eq.s32.totalorder %s1235_s4, 0 }
  0x50   : > { %1160 = dma.done.wait (%p1382_p3), [#allocation6], 8192   ;;  %p1383_p7 = pmov %p1382_p3 }
  0x51   : > { %v981_v0 = vld [vmem:[#allocation5 + $0x4] ss:$8 sps:$4 sm:$0xff]   ;;  %v985_v2 = vld [vmem:[#allocation5] ss:$8 sps:$4 sm:$0xff]   ;;  %v987_v4 = vld [vmem:[#allocation5 + $0x14] ss:$8 sps:$4 sm:$0xff]  }
  0x52   : > { %1162 = vsyncadd (%p1383_p7), [#allocation6], 4294959104  ;;  %v983_v1 = vld [vmem:[#allocation5 + $0x104] ss:$8 sps:$4 sm:$0xff]   ;;  %661 = vmatprep.subr.bf16.mxu1 %v981_v0  ;;  %v986_v3 = vld [vmem:[#allocation5 + $0x100] ss:$8 sps:$4 sm:$0xff]  }
  0x53   : > { %702 = vmatprep.subr.bf16.mxu0 %v983_v1  ;;  %662 = vmatpush1.bf16.msra.mxu1 %v985_v2  ;;  %v989_v5 = vld [vmem:[#allocation5 + $0x114] ss:$8 sps:$4 sm:$0xff]   ;;  %v991_v6 = vld [vmem:[#allocation5 + $0x10] ss:$8 sps:$4 sm:$0xff]   ;;  %v993_v8 = vld [vmem:[#allocation5 + $0x24] ss:$8 sps:$4 sm:$0xff]  }
  0x54   : > { %703 = vmatpush1.bf16.msra.mxu0 %v986_v3  ;;  %663 = vmatprep.subr.bf16.mxu1 %v987_v4  ;;  %v992_v7 = vld [vmem:[#allocation5 + $0x110] ss:$8 sps:$4 sm:$0xff]   ;;  %v995_v9 = vld [vmem:[#allocation5 + $0x124] ss:$8 sps:$4 sm:$0xff]   ;;  %v997_v10 = vld [vmem:[#allocation5 + $0x20] ss:$8 sps:$4 sm:$0xff]  }
  0x55   : > { %704 = vmatprep.subr.bf16.mxu0 %v989_v5  ;;  %v998_v11 = vld [vmem:[#allocation5 + $0x120] ss:$8 sps:$4 sm:$0xff]   ;;  %v999_v12 = vld [vmem:[#allocation5 + $0x34] ss:$8 sps:$4 sm:$0xff]   ;;  %v1003_v14 = vld [vmem:[#allocation5 + $0x30] ss:$8 sps:$4 sm:$0xff]  }
  0x56   : > { %v1001_v13 = vld [vmem:[#allocation5 + $0x134] ss:$8 sps:$4 sm:$0xff]   ;;  %v1004_v15 = vld [vmem:[#allocation5 + $0x130] ss:$8 sps:$4 sm:$0xff]   ;;  %v1005_v16 = vld [vmem:[#allocation5 + $0x44] ss:$8 sps:$4 sm:$0xff]  }
  0x57   : > { %664 = vmatpush1.bf16.msra.mxu1 %v991_v6  ;;  %v1007_v17 = vld [vmem:[#allocation5 + $0x144] ss:$8 sps:$4 sm:$0xff]   ;;  %v1009_v18 = vld [vmem:[#allocation5 + $0x40] ss:$8 sps:$4 sm:$0xff]   ;;  %v1011_v20 = vld [vmem:[#allocation5 + $0x54] ss:$8 sps:$4 sm:$0xff]  }
  0x58   : > { %705 = vmatpush1.bf16.msra.mxu0 %v992_v7  ;;  %665 = vmatprep.subr.bf16.mxu1 %v993_v8  ;;  %v1010_v19 = vld [vmem:[#allocation5 + $0x140] ss:$8 sps:$4 sm:$0xff]   ;;  %v1013_v21 = vld [vmem:[#allocation5 + $0x154] ss:$8 sps:$4 sm:$0xff]   ;;  %v1015_v22 = vld [vmem:[#allocation5 + $0x50] ss:$8 sps:$4 sm:$0xff]   ;;  %v331_v8 = vlaneseq }
  0x59   : > { %706 = vmatprep.subr.bf16.mxu0 %v995_v9  ;;  %v1016_v23 = vld [vmem:[#allocation5 + $0x150] ss:$8 sps:$4 sm:$0xff]   ;;  %v1017_v24 = vld [vmem:[#allocation5 + $0x64] ss:$8 sps:$4 sm:$0xff]   ;;  %v1021_v26 = vld [vmem:[#allocation5 + $0x60] ss:$8 sps:$4 sm:$0xff]  }
  0x5a   : > { %v1019_v25 = vld [vmem:[#allocation5 + $0x164] ss:$8 sps:$4 sm:$0xff]   ;;  %v1022_v27 = vld [vmem:[#allocation5 + $0x160] ss:$8 sps:$4 sm:$0xff]   ;;  %v1023_v28 = vld [vmem:[#allocation5 + $0x74] ss:$8 sps:$4 sm:$0xff]  }
  0x5b   : > { %666 = vmatpush1.bf16.msra.mxu1 %v997_v10  ;;  %v1025_v29 = vld [vmem:[#allocation5 + $0x174] ss:$8 sps:$4 sm:$0xff]   ;;  %v1027_v30 = vld [vmem:[#allocation5 + $0x70] ss:$8 sps:$4 sm:$0xff]   ;;  %v1029_v32 = vld [vmem:[#allocation5 + $0x84] ss:$8 sps:$4 sm:$0xff]  }
  0x5c   : > { %707 = vmatpush1.bf16.msra.mxu0 %v998_v11  ;;  %667 = vmatprep.subr.bf16.mxu1 %v999_v12  ;;  %v1028_v31 = vld [vmem:[#allocation5 + $0x170] ss:$8 sps:$4 sm:$0xff]   ;;  %v1031_v33 = vld [vmem:[#allocation5 + $0x184] ss:$8 sps:$4 sm:$0xff]   ;;  %v1033_v34 = vld [vmem:[#allocation5 + $0x80] ss:$8 sps:$4 sm:$0xff]  }
  0x5d   : > { %708 = vmatprep.subr.bf16.mxu0 %v1001_v13  ;;  %v1034_v35 = vld [vmem:[#allocation5 + $0x180] ss:$8 sps:$4 sm:$0xff]   ;;  %v1035_v36 = vld [vmem:[#allocation5 + $0x94] ss:$8 sps:$4 sm:$0xff]   ;;  %v1039_v38 = vld [vmem:[#allocation5 + $0x90] ss:$8 sps:$4 sm:$0xff]  }
  0x5e   : > { %v1037_v37 = vld [vmem:[#allocation5 + $0x194] ss:$8 sps:$4 sm:$0xff]   ;;  %v1040_v39 = vld [vmem:[#allocation5 + $0x190] ss:$8 sps:$4 sm:$0xff]   ;;  %v1041_v40 = vld [vmem:[#allocation5 + $0xa4] ss:$8 sps:$4 sm:$0xff]  }
  0x5f   : > { %668 = vmatpush1.bf16.msra.mxu1 %v1003_v14  ;;  %v1043_v41 = vld [vmem:[#allocation5 + $0x1a4] ss:$8 sps:$4 sm:$0xff]   ;;  %v1045_v42 = vld [vmem:[#allocation5 + $0xa0] ss:$8 sps:$4 sm:$0xff]   ;;  %v1047_v44 = vld [vmem:[#allocation5 + $0xb4] ss:$8 sps:$4 sm:$0xff]  }
  0x60   : > { %709 = vmatpush1.bf16.msra.mxu0 %v1004_v15  ;;  %669 = vmatprep.subr.bf16.mxu1 %v1005_v16  ;;  %v1046_v43 = vld [vmem:[#allocation5 + $0x1a0] ss:$8 sps:$4 sm:$0xff]   ;;  %v1049_v45 = vld [vmem:[#allocation5 + $0x1b4] ss:$8 sps:$4 sm:$0xff]   ;;  %v1051_v49 = vld [vmem:[#allocation5 + $0xb0] ss:$8 sps:$4 sm:$0xff]  }
  0x61   : > { %710 = vmatprep.subr.bf16.mxu0 %v1007_v17  ;;  %v258_v46 = vld [vmem:[%s1329_s9 + $0x8] sm:$0xff]  ;;  %v260_v48 = vld [vmem:[%s1329_s9 + $0x18] sm:$0xff]  ;;  %v257_v4 = vld [vmem:[%s1329_s9] sm:$0xff]  ;;  %v332_v9 = vshrl.u32 %v331_v8, 7  ;;  %s762_s28 = sld [smem:[#allocation2]]  ;;  %p253_p6 = scmp.lt.s32.totalorder %s1235_s4, 2 }
  0x62   : > { %v262_v47 = vpack.c.bf16 %v258_v46, %v258_v46  ;;  %v1052_v50 = vld [vmem:[#allocation5 + $0x1b0] ss:$8 sps:$4 sm:$0xff]   ;;  %v264_v51 = vpack.c.bf16 %v260_v48, %v260_v48  ;;  %v1053_v52 = vld [vmem:[#allocation5 + $0xc4] ss:$8 sps:$4 sm:$0xff]   ;;  %v1057_v54 = vld [vmem:[#allocation5 + $0xc0] ss:$8 sps:$4 sm:$0xff]   ;;  %v261_v6 = vpack.c.bf16 %v257_v4, %v257_v4 }
  0x63   : > { %670 = vmatpush1.bf16.msra.mxu1 %v1009_v18  ;;  %v1055_v53 = vld [vmem:[#allocation5 + $0x1c4] ss:$8 sps:$4 sm:$0xff]   ;;  %v1058_v55 = vld [vmem:[#allocation5 + $0x1c0] ss:$8 sps:$4 sm:$0xff]   ;;  %v1059_v56 = vld [vmem:[#allocation5 + $0xd4] ss:$8 sps:$4 sm:$0xff]  }
  0x64   : > { %711 = vmatpush1.bf16.msra.mxu0 %v1010_v19  ;;  %671 = vmatprep.subr.bf16.mxu1 %v1011_v20  ;;  %v1061_v57 = vld [vmem:[#allocation5 + $0x1d4] ss:$8 sps:$4 sm:$0xff]   ;;  %v1063_v58 = vld [vmem:[#allocation5 + $0xd0] ss:$8 sps:$4 sm:$0xff]   ;;  %v1065_v60 = vld [vmem:[#allocation5 + $0xe4] ss:$8 sps:$4 sm:$0xff]  }
  0x65   : > { %712 = vmatprep.subr.bf16.mxu0 %v1013_v21  ;;  %693 = vmatprep.mubr.bf16.mxu1 %v262_v47  ;;  %v1064_v59 = vld [vmem:[#allocation5 + $0x1d0] ss:$8 sps:$4 sm:$0xff]   ;;  %v1067_v61 = vld [vmem:[#allocation5 + $0x1e4] ss:$8 sps:$4 sm:$0xff]   ;;  %v1069_v62 = vld [vmem:[#allocation5 + $0xe0] ss:$8 sps:$4 sm:$0xff]  }
  0x66   : > { %734 = vmatprep.mubr.bf16.mxu0 %v264_v51  ;;  %v1070_v63 = vld [vmem:[#allocation5 + $0x1e0] ss:$8 sps:$4 sm:$0xff]   ;;  %v1071_v0 = vld [vmem:[#allocation5 + $0xf4] ss:$8 sps:$4 sm:$0xff]   ;;  %v1075_v2 = vld [vmem:[#allocation5 + $0xf0] ss:$8 sps:$4 sm:$0xff]  }
  0x67   : > { %672 = vmatpush1.bf16.msra.mxu1 %v1015_v22  ;;  %v1073_v1 = vld [vmem:[#allocation5 + $0x1f4] ss:$8 sps:$4 sm:$0xff]   ;;  %v1076_v3 = vld [vmem:[#allocation5 + $0x1f0] ss:$8 sps:$4 sm:$0xff]   ;;  %v333_v10 = vsub.s32 0, %v332_v9  ;;  %v337_v12 = vsub.s32 1, %v332_v9 }
  0x68   : > { %713 = vmatpush1.bf16.msra.mxu0 %v1016_v23  ;;  %673 = vmatprep.subr.bf16.mxu1 %v1017_v24  ;;  %v259_v5 = vld [vmem:[%s1329_s9 + $0x10] sm:$0xff]  ;;  %v329_v11 = vld [vmem:[%s1369_s2] sm:$0x3]  ;;  %s1389_s4 = smov (!%p253_p6, %s1235_s4), 2  ;;  %vm770_vm0 = vcmask 7168  }
  0x69   : > { %714 = vmatprep.subr.bf16.mxu0 %v1019_v25  ;;  %v263_v7 = vpack.c.bf16 %v259_v5, %v259_v5  ;;  %v334_v13 = vrot.slane %v329_v11, %v333_v10  ;;  %v338_v14 = vrot.slane %v329_v11, %v337_v12  ;;  %v745_v17 = vld [vmem:[%s1370_s3] sm:$0x3]  ;;  %s857_s30 = sshll.u32 %s1389_s4, 3 }
  0x6a   : > { %s256_s11 = scalar_lea.vmem %s1372_s5, %s857_s30 }
  0x6b   : > { %674 = vmatpush1.bf16.msra.mxu1 %v1021_v26 }
  0x6c   : > { %715 = vmatpush1.bf16.msra.mxu0 %v1022_v27  ;;  %675 = vmatprep.subr.bf16.mxu1 %v1023_v28  ;;  %v750_v27 = vrot.slane %v745_v17, %v333_v10 }
  0x6d   : > { %716 = vmatprep.subr.bf16.mxu0 %v1025_v29  ;;  %v754_v29 = vrot.slane %v745_v17, %v337_v12 }
  0x6f   : > { %676 = vmatpush1.bf16.msra.mxu1 %v1027_v30 }
  0x70   : > { %717 = vmatpush1.bf16.msra.mxu0 %v1028_v31  ;;  %677 = vmatprep.subr.bf16.mxu1 %v1029_v32 }
  0x71   : > { %718 = vmatprep.subr.bf16.mxu0 %v1031_v33 }
  0x73   : > { %678 = vmatpush1.bf16.msra.mxu1 %v1033_v34 }
  0x74   : > { %719 = vmatpush1.bf16.msra.mxu0 %v1034_v35  ;;  %679 = vmatprep.subr.bf16.mxu1 %v1035_v36  ;;  %v763_v35 = vstv %s762_s28 }
  0x75   : > { %720 = vmatprep.subr.bf16.mxu0 %v1037_v37 }
  0x77   : > { %680 = vmatpush1.bf16.msra.mxu1 %v1039_v38 }
  0x78   : > { %721 = vmatpush1.bf16.msra.mxu0 %v1040_v39  ;;  %681 = vmatprep.subr.bf16.mxu1 %v1041_v40 }
  0x79   : > { %722 = vmatprep.subr.bf16.mxu0 %v1043_v41 }
  0x7b   : > { %682 = vmatpush1.bf16.msra.mxu1 %v1045_v42 }
  0x7c   : > { %723 = vmatpush1.bf16.msra.mxu0 %v1046_v43  ;;  %683 = vmatprep.subr.bf16.mxu1 %v1047_v44 }
  0x7d   : > { %724 = vmatprep.subr.bf16.mxu0 %v1049_v45 }
  0x7f   : > { %684 = vmatpush1.bf16.msra.mxu1 %v1051_v49 }
  0x80   : > { %725 = vmatpush1.bf16.msra.mxu0 %v1052_v50  ;;  %685 = vmatprep.subr.bf16.mxu1 %v1053_v52 }
  0x81   : > { %726 = vmatprep.subr.bf16.mxu0 %v1055_v53 }
  0x83   : > { %686 = vmatpush1.bf16.msra.mxu1 %v1057_v54 }
  0x84   : > { %727 = vmatpush1.bf16.msra.mxu0 %v1058_v55  ;;  %687 = vmatprep.subr.bf16.mxu1 %v1059_v56 }
  0x85   : > { %728 = vmatprep.subr.bf16.mxu0 %v1061_v57 }
  0x87   : > { %688 = vmatpush1.bf16.msra.mxu1 %v1063_v58 }
  0x88   : > { %729 = vmatpush1.bf16.msra.mxu0 %v1064_v59  ;;  %689 = vmatprep.subr.bf16.mxu1 %v1065_v60 }
  0x89   : > { %730 = vmatprep.subr.bf16.mxu0 %v1067_v61 }
  0x8b   : > { %690 = vmatpush1.bf16.msra.mxu1 %v1069_v62 }
  0x8c   : > { %731 = vmatpush1.bf16.msra.mxu0 %v1070_v63  ;;  %691 = vmatprep.subr.bf16.mxu1 %v1071_v0 }
  0x8d   : > { %732 = vmatprep.subr.bf16.mxu0 %v1073_v1 }
  0x8f   : > { %692 = vmatpush1.bf16.msra.mxu1 %v1075_v2 }
  0x90   : > { %733 = vmatpush1.bf16.msra.mxu0 %v1076_v3 }
  0x92   : > { %694 = vmatmul.mubr.bf16.vlgmr.msra.gmra.mrb[0].mxu1 %v261_v6 }
  0x93   : > { %735 = vmatmul.mubr.bf16.vlgmr.msra.gmra.mrb[0].mxu0 %v263_v7 }
 0x165   : > { %v695_v15 = vpop.f32.mrb[0].mxu1 }
 0x166   : > { %v736_v16 = vpop.f32.mrb[0].mxu0  ;;  %v696_v18 = vadd.f32 %v695_v15, %v334_v13  ;;  %v697_v19 = vpop.f32.mrb[1].mxu1 }
 0x167   : > { %v738_v20 = vpop.f32.mrb[1].mxu0  ;;  %v698_v21 = vadd.f32 %v697_v19, %v338_v14  ;;  %v699_v22 = vpop.f32.mrb[2].mxu1 }
 0x168   : > { %v740_v23 = vpop.f32.mrb[2].mxu0  ;;  %v737_v24 = vadd.f32 %v736_v16, %v696_v18  ;;  %v700_v25 = vpop.f32.mrb[3].mxu1 }
 0x169   : > { %v741_v26 = vpop.f32.mrb[3].mxu0  ;;  %v739_v28 = vadd.f32 %v738_v20, %v698_v21 }
 0x16a   : > { %v743_v30 = vmax.f32 %v737_v24, 0.0 }
 0x16b   : > { %v744_v31 = vmax.f32 %v739_v28, 0.0 }
 0x16c   : > { %v757_v32 = vmul.f32 %v750_v27, %v743_v30 }
 0x16d   : > { %v758_v33 = vmul.f32 %v754_v29, %v744_v31 }
 0x16f   : > { %v759_v34 = vadd.f32 %v758_v33, %v757_v32 }
 0x171   : > { %760 = vadd.xlane.f32.xlu0 %v759_v34 }
 0x1fe   : > { %v761_v36 = vpop.xlane.xlu0 %760 }
 0x1ff   : > { %v764_v37 = vadd.f32 %v763_v35, %v761_v36 }
 0x201   : > { %v765_v38 = vsub.f32 0.0, %v764_v37 }
 0x203   : > { %v766_v39 = vmul.f32 1.442695, %v765_v38 }
 0x205   : > { %1077 = vpow2.f32 %v766_v39 }
 0x20f   : > { %v1078_v40 = vpop.eup %1077 }
 0x210   : > { %v768_v41 = vadd.f32 1.0, %v1078_v40 }
 0x212   : > { %1079 = vrcp.f32 %v768_v41 }
 0x21c   : > { %v1080_v42 = vpop.eup %1079 }
 0x21d   : > { %771 = vst.msk [vmem:[%s256_s11] sm:$0xff] %vm770_vm0, %v1080_v42 }
 0x21e PF: > { %p17_p8 = scmp.ge.s32.totalorder %s1260_s29, 5   ;;  %s1384_s20 = smov %s1169_s21 }
 0x21f   : > { %s1385_s21 = smov %s1173_s22  ;;  %s1386_s22 = smov %s1286_s19 }
 0x220   : > { %s1387_s23 = smov %s1260_s29  ;;  %19 = sbr.rel (!%p17_p8) target bundleno = 6 (0x6), region = 84 }
 0x227   :  { %791 = vsyncpa [#allocation4], 1 }
 0x228   :  { %793 = vsyncpa [#allocation4 + $0x1], 1 }
 0x229   :  { %794 = vsyncpa [#allocation6], 1 }

</bundles_post_ra>
